<compile_context>
chip_gen: v6e
topology: v6e:2x2x1
jax: 0.10.0
libtpu: 0.0.40
codegen_flags: <defaults>
</compile_context>

<pallas_src>
import functools

import jax
import jax.numpy as jnp
from jax.experimental import pallas as pl
from jax.experimental.pallas import tpu as pltpu


def _round_up(n, m):
    return (n + m - 1) // m * m


def ffn_kernel(x_ref, g_ref, beta_ref, w1_ref, b1_ref, w2_ref, b2_ref, o_ref, *, d_valid):
    # x_ref: (tm, Dp) f32 tile of flattened rows (feature dim padded to Dp lanes).
    x = x_ref[...]
    d_pad = x.shape[-1]

    # LayerNorm over the true feature count (eps matches torch default 1e-5).
    if d_valid == d_pad:
        mean = jnp.mean(x, axis=-1, keepdims=True)
        xc = x - mean
        var = jnp.mean(xc * xc, axis=-1, keepdims=True)
    else:
        # Padded lanes of x are zero (wrapper guarantees it), so the sum is exact;
        # mask (x - mean) so padded lanes don't pollute the variance.
        mask = jax.lax.broadcasted_iota(jnp.int32, x.shape, 1) < d_valid
        inv_d = 1.0 / d_valid
        mean = jnp.sum(x, axis=-1, keepdims=True) * inv_d
        xc = jnp.where(mask, x - mean, 0.0)
        var = jnp.sum(xc * xc, axis=-1, keepdims=True) * inv_d
    normed = xc * jax.lax.rsqrt(var + 1e-5) * g_ref[...] + beta_ref[...]

    # Linear(input_size -> filter_size) + ReLU.  bf16 MXU operands, f32 accumulate.
    h = jnp.dot(normed.astype(jnp.bfloat16), w1_ref[...],
                preferred_element_type=jnp.float32) + b1_ref[...]
    h = jnp.maximum(h, 0.0)

    # Linear(filter_size -> hidden_size).
    y = jnp.dot(h.astype(jnp.bfloat16), w2_ref[...],
                preferred_element_type=jnp.float32) + b2_ref[...]

    # Dropout: inference semantics (identity).
    # TODO(synk): training-mode dropout mask via pltpu.prng_seed / prng_random_bits.

    # Residual add (f32), then cast to output dtype.
    o_ref[...] = (y + x).astype(o_ref.dtype)


def transformer_feed_forward(x, gamma, beta, w1, b1, w2, b2, *, tm=256):
    """x: (B, S, D).  Returns (B, S, H) with H == D (residual add).

    tm: row tile.  256 for v6e/v7x; 128 is enough to saturate the v5e MXU.
    """
    B, S, D = x.shape
    F_ = w1.shape[1]
    H = w2.shape[1]
    assert H == D, "residual add requires hidden_size == input_size"
    N = B * S

    # Lane-dense padding of feature dims (multiples of 128).
    Dp = _round_up(D, 128)
    Fp = _round_up(F_, 128)
    Hp = Dp  # H == D

    # Row tiling: clamp tile to the (8-aligned) row count for small inputs.
    tm_eff = min(tm, _round_up(N, 8))
    Np = _round_up(N, tm_eff)

    # Zero-pad rows and features.  Zero-padded gamma/beta/W rows/cols guarantee
    # padded lanes contribute nothing to the matmuls or the output.
    x2 = jnp.pad(x.reshape(N, D).astype(jnp.float32), ((0, Np - N), (0, Dp - D)))

    def pad_row(v, n):
        return jnp.pad(v.astype(jnp.float32), (0, n - v.shape[0])).reshape(1, n)

    g_p = pad_row(gamma, Dp)
    be_p = pad_row(beta, Dp)
    b1_p = pad_row(b1, Fp)
    b2_p = pad_row(b2, Hp)
    w1_p = jnp.pad(w1, ((0, Dp - D), (0, Fp - F_))).astype(jnp.bfloat16)
    w2_p = jnp.pad(w2, ((0, Fp - F_), (0, Hp - H))).astype(jnp.bfloat16)

    flops = 2 * Np * Dp * Fp + 2 * Np * Fp * Hp
    bytes_accessed = (
        Np * Dp * 4 + Np * Hp * 4            # x in, out
        + (Dp * Fp + Fp * Hp) * 2            # bf16 weights
        + (2 * Dp + Fp + Hp) * 4             # gamma/beta/biases
    )

    # Note: for very large filter_size, the next step would be an F-axis
    # ("arbitrary") grid dim with blocked W1/W2 and a VMEM f32 accumulator;
    # bf16 + single-buffered weights is sufficient at these sizes.
    def run(single_buffer_weights):
        w_kwargs = dict(pipeline_mode=pl.Buffered(1)) if single_buffer_weights else {}
        const = lambda i: (0, 0)
        in_specs = [
            pl.BlockSpec((tm_eff, Dp), lambda i: (i, 0)),   # x rows
            pl.BlockSpec((1, Dp), const, **w_kwargs),       # gamma
            pl.BlockSpec((1, Dp), const, **w_kwargs),       # beta
            pl.BlockSpec((Dp, Fp), const, **w_kwargs),      # W1 (bf16)
            pl.BlockSpec((1, Fp), const, **w_kwargs),       # b1
            pl.BlockSpec((Fp, Hp), const, **w_kwargs),      # W2 (bf16)
            pl.BlockSpec((1, Hp), const, **w_kwargs),       # b2
        ]
        return pl.pallas_call(
            functools.partial(ffn_kernel, d_valid=D),
            out_shape=jax.ShapeDtypeStruct((Np, Hp), x.dtype),
            grid_spec=pltpu.PrefetchScalarGridSpec(
                num_scalar_prefetch=0,
                grid=(Np // tm_eff,),
                in_specs=in_specs,
                out_specs=pl.BlockSpec((tm_eff, Hp), lambda i: (i, 0)),
            ),
            compiler_params=pltpu.CompilerParams(
                dimension_semantics=("parallel",),
                vmem_limit_bytes=64 * 1024 * 1024,
            ),
            cost_estimate=pl.CostEstimate(
                flops=flops, transcendentals=0, bytes_accessed=bytes_accessed),
        )(x2, g_p, be_p, w1_p, b1_p, w2_p, b2_p)

    try:
        out = run(single_buffer_weights=True)
    except Exception:
        # Fallback for jax versions that reject pipeline_mode=pl.Buffered(1) on a
        # top-level pallas_call BlockSpec.
        out = run(single_buffer_weights=False)

    return out[:N, :H].reshape(B, S, H)


def xavier_uniform(key, fan_in, fan_out, dtype=jnp.float32):
    limit = jnp.sqrt(6.0 / (fan_in + fan_out))
    return jax.random.uniform(key, (fan_in, fan_out), dtype, -limit, limit)


if __name__ == "__main__":
    # Small shapes implied by the module: input_size == hidden_size (residual add).
    B, S = 2, 8
    input_size, filter_size, hidden_size = 32, 64, 32

    key = jax.random.PRNGKey(0)
    kx, kw1, kw2, kb1, kb2 = jax.random.split(key, 5)

    x = jax.random.normal(kx, (B, S, input_size), jnp.float32)

    # LayerNorm params (torch default init: gamma=1, beta=0).
    gamma = jnp.ones((input_size,), jnp.float32)
    beta = jnp.zeros((input_size,), jnp.float32)

    # Linear weights: xavier_uniform (as in weights_init); biases small uniform.
    w1 = xavier_uniform(kw1, input_size, filter_size)
    b1 = jax.random.uniform(kb1, (filter_size,), jnp.float32, -0.01, 0.01)
    w2 = xavier_uniform(kw2, filter_size, hidden_size)
    b2 = jax.random.uniform(kb2, (hidden_size,), jnp.float32, -0.01, 0.01)

    out = transformer_feed_forward(x, gamma, beta, w1, b1, w2, b2)
    out = jax.block_until_ready(out)

    # Pure-JAX references.
    mean = jnp.mean(x, axis=-1, keepdims=True)
    var = jnp.mean((x - mean) ** 2, axis=-1, keepdims=True)
    nrm = (x - mean) / jnp.sqrt(var + 1e-5) * gamma + beta

    # (1) Reference matching the kernel's bf16 matmul operands (tight tolerance).
    h_ref = jnp.maximum(
        jnp.einsum("bsd,df->bsf", nrm.astype(jnp.bfloat16), w1.astype(jnp.bfloat16),
                   preferred_element_type=jnp.float32) + b1, 0.0)
    ref_bf16 = jnp.einsum("bsf,fh->bsh", h_ref.astype(jnp.bfloat16),
                          w2.astype(jnp.bfloat16),
                          preferred_element_type=jnp.float32) + b2 + x
    assert jnp.allclose(out, ref_bf16, atol=2e-2, rtol=2e-2), "mismatch vs bf16-matched reference"

    # (2) Full-f32 module reference (loose tolerance: bf16 matmul rounding only).
    ref_f32 = jnp.maximum(nrm @ w1 + b1, 0.0) @ w2 + b2 + x
    assert jnp.allclose(out, ref_f32, atol=1e-1, rtol=1e-1), "mismatch vs f32 module reference"

    print("KERNEL_OK")
</pallas_src>

<mosaic_0001>
module attributes {stable_mosaic.version = 11 : i64} {
  func.func @ffn_kernel(%arg0: i32, %arg1: memref<16x128xf32, #tpu.memory_space<vmem>>, %arg2: memref<1x128xf32, #tpu.memory_space<vmem>>, %arg3: memref<1x128xf32, #tpu.memory_space<vmem>>, %arg4: memref<128x128xbf16, #tpu.memory_space<vmem>>, %arg5: memref<1x128xf32, #tpu.memory_space<vmem>>, %arg6: memref<128x128xbf16, #tpu.memory_space<vmem>>, %arg7: memref<1x128xf32, #tpu.memory_space<vmem>>, %arg8: memref<16x128xf32, #tpu.memory_space<vmem>>) attributes {dimension_semantics = [#tpu.dimension_semantics<parallel>], iteration_bounds = array<i64: 1>, scalar_prefetch = 0 : i64, scratch_operands = 0 : i64, tpu.core_type = #tpu.core_type<tc>, window_params = [{transform_indices = @transform_0, window_bounds = array<i64: 16, 128>}, {pipeline_mode = #tpu.pipeline_mode<synchronous>, transform_indices = @transform_1, window_bounds = array<i64: 1, 128>}, {pipeline_mode = #tpu.pipeline_mode<synchronous>, transform_indices = @transform_2, window_bounds = array<i64: 1, 128>}, {pipeline_mode = #tpu.pipeline_mode<synchronous>, transform_indices = @transform_3, window_bounds = array<i64: 128, 128>}, {pipeline_mode = #tpu.pipeline_mode<synchronous>, transform_indices = @transform_4, window_bounds = array<i64: 1, 128>}, {pipeline_mode = #tpu.pipeline_mode<synchronous>, transform_indices = @transform_5, window_bounds = array<i64: 128, 128>}, {pipeline_mode = #tpu.pipeline_mode<synchronous>, transform_indices = @transform_6, window_bounds = array<i64: 1, 128>}, {transform_indices = @transform_7, window_bounds = array<i64: 16, 128>}]} {
    %c0 = arith.constant 0 : index
    %c0_0 = arith.constant 0 : index
    %0 = vector.load %arg1[%c0, %c0_0] : memref<16x128xf32, #tpu.memory_space<vmem>>, vector<16x128xf32>
    %1 = tpu.iota {dimensions = array<i32: 1>} : vector<16x128xi32>
    %c32_i32 = arith.constant 32 : i32
    %2 = vector.broadcast %c32_i32 : i32 to vector<16x128xi32>
    %3 = arith.cmpi slt, %1, %2 : vector<16x128xi32>
    %cst = arith.constant dense<0.000000e+00> : vector<16xf32>
    %4 = vector.multi_reduction <add>, %0, %cst [1] : vector<16x128xf32> to vector<16xf32>
    %5 = vector.shape_cast %4 : vector<16xf32> to vector<16x1xf32>
    %cst_1 = arith.constant 3.125000e-02 : f32
    %6 = vector.broadcast %cst_1 : f32 to vector<16x1xf32>
    %7 = arith.mulf %5, %6 : vector<16x1xf32>
    %8 = vector.broadcast %7 : vector<16x1xf32> to vector<16x128xf32>
    %9 = arith.subf %0, %8 : vector<16x128xf32>
    %cst_2 = arith.constant 0.000000e+00 : f32
    %10 = vector.broadcast %cst_2 : f32 to vector<16x128xf32>
    %11 = arith.select %3, %9, %10 : vector<16x128xi1>, vector<16x128xf32>
    %12 = arith.mulf %11, %11 : vector<16x128xf32>
    %cst_3 = arith.constant dense<0.000000e+00> : vector<16xf32>
    %13 = vector.multi_reduction <add>, %12, %cst_3 [1] : vector<16x128xf32> to vector<16xf32>
    %14 = vector.shape_cast %13 : vector<16xf32> to vector<16x1xf32>
    %cst_4 = arith.constant 3.125000e-02 : f32
    %15 = vector.broadcast %cst_4 : f32 to vector<16x1xf32>
    %16 = arith.mulf %14, %15 : vector<16x1xf32>
    %cst_5 = arith.constant 9.99999974E-6 : f32
    %17 = vector.broadcast %cst_5 : f32 to vector<16x1xf32>
    %18 = arith.addf %16, %17 : vector<16x1xf32>
    %19 = math.rsqrt %18 : vector<16x1xf32>
    %20 = vector.broadcast %19 : vector<16x1xf32> to vector<16x128xf32>
    %21 = arith.mulf %11, %20 : vector<16x128xf32>
    %c0_6 = arith.constant 0 : index
    %c0_7 = arith.constant 0 : index
    %22 = vector.load %arg2[%c0_6, %c0_7] : memref<1x128xf32, #tpu.memory_space<vmem>>, vector<1x128xf32>
    %23 = vector.broadcast %22 : vector<1x128xf32> to vector<16x128xf32>
    %24 = arith.mulf %21, %23 : vector<16x128xf32>
    %c0_8 = arith.constant 0 : index
    %c0_9 = arith.constant 0 : index
    %25 = vector.load %arg3[%c0_8, %c0_9] : memref<1x128xf32, #tpu.memory_space<vmem>>, vector<1x128xf32>
    %26 = vector.broadcast %25 : vector<1x128xf32> to vector<16x128xf32>
    %27 = arith.addf %24, %26 : vector<16x128xf32>
    %28 = arith.truncf %27 : vector<16x128xf32> to vector<16x128xbf16>
    %c0_10 = arith.constant 0 : index
    %c0_11 = arith.constant 0 : index
    %29 = vector.load %arg4[%c0_10, %c0_11] : memref<128x128xbf16, #tpu.memory_space<vmem>>, vector<128x128xbf16>
    %cst_12 = arith.constant dense<0.000000e+00> : vector<16x128xf32>
    %30 = tpu.matmul %28, %29, %cst_12 {dimension_numbers = #tpu.dot_dimension_numbers<[1], [0], [0], [1], [0, 0, 1, 1], [], []>} : vector<16x128xbf16>, vector<128x128xbf16>, vector<16x128xf32> -> vector<16x128xf32>
    %c0_13 = arith.constant 0 : index
    %c0_14 = arith.constant 0 : index
    %31 = vector.load %arg5[%c0_13, %c0_14] : memref<1x128xf32, #tpu.memory_space<vmem>>, vector<1x128xf32>
    %32 = vector.broadcast %31 : vector<1x128xf32> to vector<16x128xf32>
    %33 = arith.addf %30, %32 : vector<16x128xf32>
    %cst_15 = arith.constant 0.000000e+00 : f32
    %34 = vector.broadcast %cst_15 : f32 to vector<16x128xf32>
    %35 = arith.maximumf %33, %34 : vector<16x128xf32>
    %36 = arith.truncf %35 : vector<16x128xf32> to vector<16x128xbf16>
    %c0_16 = arith.constant 0 : index
    %c0_17 = arith.constant 0 : index
    %37 = vector.load %arg6[%c0_16, %c0_17] : memref<128x128xbf16, #tpu.memory_space<vmem>>, vector<128x128xbf16>
    %cst_18 = arith.constant dense<0.000000e+00> : vector<16x128xf32>
    %38 = tpu.matmul %36, %37, %cst_18 {dimension_numbers = #tpu.dot_dimension_numbers<[1], [0], [0], [1], [0, 0, 1, 1], [], []>} : vector<16x128xbf16>, vector<128x128xbf16>, vector<16x128xf32> -> vector<16x128xf32>
    %c0_19 = arith.constant 0 : index
    %c0_20 = arith.constant 0 : index
    %39 = vector.load %arg7[%c0_19, %c0_20] : memref<1x128xf32, #tpu.memory_space<vmem>>, vector<1x128xf32>
    %40 = vector.broadcast %39 : vector<1x128xf32> to vector<16x128xf32>
    %41 = arith.addf %38, %40 : vector<16x128xf32>
    %42 = arith.addf %41, %0 : vector<16x128xf32>
    %c0_21 = arith.constant 0 : index
    %c0_22 = arith.constant 0 : index
    %43 = vector.load %arg8[%c0_21, %c0_22] : memref<16x128xf32, #tpu.memory_space<vmem>>, vector<16x128xf32>
    tpu.vector_store %arg8[%c0_21, %c0_22], %42 {strides = array<i32>} : memref<16x128xf32, #tpu.memory_space<vmem>>, vector<16x128xf32>,
    return
  }
  func.func @transform_0(%arg0: i32) -> (i32, i32) {
    %c0_i32 = arith.constant 0 : i32
    %c0_i32_0 = arith.constant 0 : i32
    return %arg0, %c0_i32 : i32, i32
  }
  func.func @transform_1(%arg0: i32) -> (i32, i32) {
    %c0_i32 = arith.constant 0 : i32
    %c0_i32_0 = arith.constant 0 : i32
    %c0_i32_1 = arith.constant 0 : i32
    return %c0_i32, %c0_i32_0 : i32, i32
  }
  func.func @transform_2(%arg0: i32) -> (i32, i32) {
    %c0_i32 = arith.constant 0 : i32
    %c0_i32_0 = arith.constant 0 : i32
    %c0_i32_1 = arith.constant 0 : i32
    return %c0_i32, %c0_i32_0 : i32, i32
  }
  func.func @transform_3(%arg0: i32) -> (i32, i32) {
    %c0_i32 = arith.constant 0 : i32
    %c0_i32_0 = arith.constant 0 : i32
    %c0_i32_1 = arith.constant 0 : i32
    return %c0_i32, %c0_i32_0 : i32, i32
  }
  func.func @transform_4(%arg0: i32) -> (i32, i32) {
    %c0_i32 = arith.constant 0 : i32
    %c0_i32_0 = arith.constant 0 : i32
    %c0_i32_1 = arith.constant 0 : i32
    return %c0_i32, %c0_i32_0 : i32, i32
  }
  func.func @transform_5(%arg0: i32) -> (i32, i32) {
    %c0_i32 = arith.constant 0 : i32
    %c0_i32_0 = arith.constant 0 : i32
    %c0_i32_1 = arith.constant 0 : i32
    return %c0_i32, %c0_i32_0 : i32, i32
  }
  func.func @transform_6(%arg0: i32) -> (i32, i32) {
    %c0_i32 = arith.constant 0 : i32
    %c0_i32_0 = arith.constant 0 : i32
    %c0_i32_1 = arith.constant 0 : i32
    return %c0_i32, %c0_i32_0 : i32, i32
  }
  func.func @transform_7(%arg0: i32) -> (i32, i32) {
    %c0_i32 = arith.constant 0 : i32
    %c0_i32_0 = arith.constant 0 : i32
    return %arg0, %c0_i32 : i32, i32
  }
}

module attributes {stable_mosaic.version = 11 : i64} {
  func.func @ffn_kernel(%arg0: i32, %arg1: memref<16x128xf32, #tpu.memory_space<vmem>>, %arg2: memref<1x128xf32, #tpu.memory_space<vmem>>, %arg3: memref<1x128xf32, #tpu.memory_space<vmem>>, %arg4: memref<128x128xbf16, #tpu.memory_space<vmem>>, %arg5: memref<1x128xf32, #tpu.memory_space<vmem>>, %arg6: memref<128x128xbf16, #tpu.memory_space<vmem>>, %arg7: memref<1x128xf32, #tpu.memory_space<vmem>>, %arg8: memref<16x128xf32, #tpu.memory_space<vmem>>) attributes {dimension_semantics = [#tpu.dimension_semantics<parallel>], iteration_bounds = array<i64: 1>, scalar_prefetch = 0 : i64, scratch_operands = 0 : i64, tpu.core_type = #tpu.core_type<tc>, window_params = [{transform_indices = @transform_0, window_bounds = array<i64: 16, 128>}, {pipeline_mode = #tpu.pipeline_mode<synchronous>, transform_indices = @transform_1, window_bounds = array<i64: 1, 128>}, {pipeline_mode = #tpu.pipeline_mode<synchronous>, transform_indices = @transform_2, window_bounds = array<i64: 1, 128>}, {pipeline_mode = #tpu.pipeline_mode<synchronous>, transform_indices = @transform_3, window_bounds = array<i64: 128, 128>}, {pipeline_mode = #tpu.pipeline_mode<synchronous>, transform_indices = @transform_4, window_bounds = array<i64: 1, 128>}, {pipeline_mode = #tpu.pipeline_mode<synchronous>, transform_indices = @transform_5, window_bounds = array<i64: 128, 128>}, {pipeline_mode = #tpu.pipeline_mode<synchronous>, transform_indices = @transform_6, window_bounds = array<i64: 1, 128>}, {transform_indices = @transform_7, window_bounds = array<i64: 16, 128>}]} {
    %c0 = arith.constant 0 : index
    %c0_0 = arith.constant 0 : index
    %0 = vector.load %arg1[%c0, %c0_0] : memref<16x128xf32, #tpu.memory_space<vmem>>, vector<16x128xf32>
    %1 = tpu.iota {dimensions = array<i32: 1>} : vector<16x128xi32>
    %c32_i32 = arith.constant 32 : i32
    %2 = vector.broadcast %c32_i32 : i32 to vector<16x128xi32>
    %3 = arith.cmpi slt, %1, %2 : vector<16x128xi32>
    %cst = arith.constant dense<0.000000e+00> : vector<16xf32>
    %4 = vector.multi_reduction <add>, %0, %cst [1] : vector<16x128xf32> to vector<16xf32>
    %5 = vector.shape_cast %4 : vector<16xf32> to vector<16x1xf32>
    %cst_1 = arith.constant 3.125000e-02 : f32
    %6 = vector.broadcast %cst_1 : f32 to vector<16x1xf32>
    %7 = arith.mulf %5, %6 : vector<16x1xf32>
    %8 = vector.broadcast %7 : vector<16x1xf32> to vector<16x128xf32>
    %9 = arith.subf %0, %8 : vector<16x128xf32>
    %cst_2 = arith.constant 0.000000e+00 : f32
    %10 = vector.broadcast %cst_2 : f32 to vector<16x128xf32>
    %11 = arith.select %3, %9, %10 : vector<16x128xi1>, vector<16x128xf32>
    %12 = arith.mulf %11, %11 : vector<16x128xf32>
    %cst_3 = arith.constant dense<0.000000e+00> : vector<16xf32>
    %13 = vector.multi_reduction <add>, %12, %cst_3 [1] : vector<16x128xf32> to vector<16xf32>
    %14 = vector.shape_cast %13 : vector<16xf32> to vector<16x1xf32>
    %cst_4 = arith.constant 3.125000e-02 : f32
    %15 = vector.broadcast %cst_4 : f32 to vector<16x1xf32>
    %16 = arith.mulf %14, %15 : vector<16x1xf32>
    %cst_5 = arith.constant 9.99999974E-6 : f32
    %17 = vector.broadcast %cst_5 : f32 to vector<16x1xf32>
    %18 = arith.addf %16, %17 : vector<16x1xf32>
    %19 = math.rsqrt %18 : vector<16x1xf32>
    %20 = vector.broadcast %19 : vector<16x1xf32> to vector<16x128xf32>
    %21 = arith.mulf %11, %20 : vector<16x128xf32>
    %c0_6 = arith.constant 0 : index
    %c0_7 = arith.constant 0 : index
    %22 = vector.load %arg2[%c0_6, %c0_7] : memref<1x128xf32, #tpu.memory_space<vmem>>, vector<1x128xf32>
    %23 = vector.broadcast %22 : vector<1x128xf32> to vector<16x128xf32>
    %24 = arith.mulf %21, %23 : vector<16x128xf32>
    %c0_8 = arith.constant 0 : index
    %c0_9 = arith.constant 0 : index
    %25 = vector.load %arg3[%c0_8, %c0_9] : memref<1x128xf32, #tpu.memory_space<vmem>>, vector<1x128xf32>
    %26 = vector.broadcast %25 : vector<1x128xf32> to vector<16x128xf32>
    %27 = arith.addf %24, %26 : vector<16x128xf32>
    %28 = arith.truncf %27 : vector<16x128xf32> to vector<16x128xbf16>
    %c0_10 = arith.constant 0 : index
    %c0_11 = arith.constant 0 : index
    %29 = vector.load %arg4[%c0_10, %c0_11] : memref<128x128xbf16, #tpu.memory_space<vmem>>, vector<128x128xbf16>
    %cst_12 = arith.constant dense<0.000000e+00> : vector<16x128xf32>
    %30 = tpu.matmul %28, %29, %cst_12 {dimension_numbers = #tpu.dot_dimension_numbers<[1], [0], [0], [1], [0, 0, 1, 1], [], []>} : vector<16x128xbf16>, vector<128x128xbf16>, vector<16x128xf32> -> vector<16x128xf32>
    %c0_13 = arith.constant 0 : index
    %c0_14 = arith.constant 0 : index
    %31 = vector.load %arg5[%c0_13, %c0_14] : memref<1x128xf32, #tpu.memory_space<vmem>>, vector<1x128xf32>
    %32 = vector.broadcast %31 : vector<1x128xf32> to vector<16x128xf32>
    %33 = arith.addf %30, %32 : vector<16x128xf32>
    %cst_15 = arith.constant 0.000000e+00 : f32
    %34 = vector.broadcast %cst_15 : f32 to vector<16x128xf32>
    %35 = arith.maximumf %33, %34 : vector<16x128xf32>
    %36 = arith.truncf %35 : vector<16x128xf32> to vector<16x128xbf16>
    %c0_16 = arith.constant 0 : index
    %c0_17 = arith.constant 0 : index
    %37 = vector.load %arg6[%c0_16, %c0_17] : memref<128x128xbf16, #tpu.memory_space<vmem>>, vector<128x128xbf16>
    %cst_18 = arith.constant dense<0.000000e+00> : vector<16x128xf32>
    %38 = tpu.matmul %36, %37, %cst_18 {dimension_numbers = #tpu.dot_dimension_numbers<[1], [0], [0], [1], [0, 0, 1, 1], [], []>} : vector<16x128xbf16>, vector<128x128xbf16>, vector<16x128xf32> -> vector<16x128xf32>
    %c0_19 = arith.constant 0 : index
    %c0_20 = arith.constant 0 : index
    %39 = vector.load %arg7[%c0_19, %c0_20] : memref<1x128xf32, #tpu.memory_space<vmem>>, vector<1x128xf32>
    %40 = vector.broadcast %39 : vector<1x128xf32> to vector<16x128xf32>
    %41 = arith.addf %38, %40 : vector<16x128xf32>
    %42 = arith.addf %41, %0 : vector<16x128xf32>
    %c0_21 = arith.constant 0 : index
    %c0_22 = arith.constant 0 : index
    %43 = vector.load %arg8[%c0_21, %c0_22] : memref<16x128xf32, #tpu.memory_space<vmem>>, vector<16x128xf32>
    tpu.vector_store %arg8[%c0_21, %c0_22], %42 {strides = array<i32>} : memref<16x128xf32, #tpu.memory_space<vmem>>, vector<16x128xf32>,
    return
  }
  func.func @transform_0(%arg0: i32) -> (i32, i32) {
    %c0_i32 = arith.constant 0 : i32
    %c0_i32_0 = arith.constant 0 : i32
    return %arg0, %c0_i32 : i32, i32
  }
  func.func @transform_1(%arg0: i32) -> (i32, i32) {
    %c0_i32 = arith.constant 0 : i32
    %c0_i32_0 = arith.constant 0 : i32
    %c0_i32_1 = arith.constant 0 : i32
    return %c0_i32, %c0_i32_0 : i32, i32
  }
  func.func @transform_2(%arg0: i32) -> (i32, i32) {
    %c0_i32 = arith.constant 0 : i32
    %c0_i32_0 = arith.constant 0 : i32
    %c0_i32_1 = arith.constant 0 : i32
    return %c0_i32, %c0_i32_0 : i32, i32
  }
  func.func @transform_3(%arg0: i32) -> (i32, i32) {
    %c0_i32 = arith.constant 0 : i32
    %c0_i32_0 = arith.constant 0 : i32
    %c0_i32_1 = arith.constant 0 : i32
    return %c0_i32, %c0_i32_0 : i32, i32
  }
  func.func @transform_4(%arg0: i32) -> (i32, i32) {
    %c0_i32 = arith.constant 0 : i32
    %c0_i32_0 = arith.constant 0 : i32
    %c0_i32_1 = arith.constant 0 : i32
    return %c0_i32, %c0_i32_0 : i32, i32
  }
  func.func @transform_5(%arg0: i32) -> (i32, i32) {
    %c0_i32 = arith.constant 0 : i32
    %c0_i32_0 = arith.constant 0 : i32
    %c0_i32_1 = arith.constant 0 : i32
    return %c0_i32, %c0_i32_0 : i32, i32
  }
  func.func @transform_6(%arg0: i32) -> (i32, i32) {
    %c0_i32 = arith.constant 0 : i32
    %c0_i32_0 = arith.constant 0 : i32
    %c0_i32_1 = arith.constant 0 : i32
    return %c0_i32, %c0_i32_0 : i32, i32
  }
  func.func @transform_7(%arg0: i32) -> (i32, i32) {
    %c0_i32 = arith.constant 0 : i32
    %c0_i32_0 = arith.constant 0 : i32
    return %arg0, %c0_i32 : i32, i32
  }
}

</mosaic_0001>

<bundles_post_ra>
// kernel: tpu_custom_call.1
= control target key start
LH: loop header
LB: loop body
LE: loop exit
PB: predicated region body
PF: predicated region fallthrough
CT: control target
= control target key end

     0   :  { %12 = vsyncpa [#allocation3], 0  ;;  %s668_s0 = inlined_call_operand.hbm [shape: f32[16,128], index: 0, kind: input, shape index: {}]   ;;  %s669_s1 = inlined_call_operand.vmem [shape: f32[1,128], index: 1, kind: input, shape index: {}]   ;;  %s670_s2 = inlined_call_operand.vmem [shape: f32[1,128], index: 2, kind: input, shape index: {}]   ;;  %s671_s3 = inlined_call_operand.hbm [shape: bf16[128,128], index: 3, kind: input, shape index: {}]   ;;  %s672_s4 = inlined_call_operand.vmem [shape: f32[1,128], index: 4, kind: input, shape index: {}]   ;;  %s673_s5 = inlined_call_operand.hbm [shape: bf16[128,128], index: 5, kind: input, shape index: {}]   ;;  %s674_s6 = inlined_call_operand.vmem [shape: f32[1,128], index: 6, kind: input, shape index: {}]   ;;  %s675_s7 = inlined_call_operand.hbm [shape: f32[16,128], index: 7, kind: output, shape index: {}]  }
   0x1   :  { %13 = vsyncpa [#allocation6], 0 }
   0x2   :  { %14 = vsyncpa [#allocation4], 0  ;;  %s560_s24 = smov [#allocation5]  }
   0x3   :  { %s36_s25 = sshll.u32 %s560_s24, 4  ;;  %s37_s25 = int_to_ptr.vmem [resolvable:$true] %s36_s25 }
   0x4   :  { %s482_s26 = scalar_lea.vmem %s37_s25, 1024  ;;  %p487_p1 = scmp.lt.s32.totalorder %s37_s25, %s37_s25 }
   0x5   :  { %p483_p0 = scmp.ne.s32.totalorder %s37_s25, %s482_s26  ;;  %p488_p2 = scmp.lt.s32.totalorder %s482_s26, %s482_s26 }
   0x7   :  { %p489_p3 = por %p488_p2, %p487_p1 }
   0x9   :  { %p490_p4 = pnand %p489_p3, %p483_p0 }
   0xb   :  { %493 = shalt.err (!%p490_p4)
}
   0xc   :  { %s561_s27 = smov 64   ;;  %s562_s28 = smov 4  }
   0xd   :  { %42 = dma.hbm_to_vmem [thread:$0]  %s671_s3, 1024, %s37_s25, [#allocation6], %s561_s27, %s561_s27, %s562_s28  }
   0xe   :  { %s563_s8 = smov [#allocation2]  }
   0xf   :  { %s20_s9 = sshll.u32 %s563_s8, 4  ;;  %s21_s9 = int_to_ptr.vmem [resolvable:$true] %s20_s9 }
  0x10   :  { %s502_s10 = scalar_lea.vmem %s21_s9, 256  ;;  %p507_p6 = scmp.lt.s32.totalorder %s21_s9, %s21_s9 }
  0x11   :  { %p503_p5 = scmp.ne.s32.totalorder %s21_s9, %s502_s10  ;;  %p508_p7 = scmp.lt.s32.totalorder %s502_s10, %s502_s10 }
  0x13   :  { %p509_p8 = por %p508_p7, %p507_p6 }
  0x15   :  { %p510_p9 = pnand %p509_p8, %p503_p5 }
  0x17   :  { %513 = shalt.err (!%p510_p9)
}
  0x18   :  { %s564_s11 = smov 128   ;;  %s565_s12 = smov 8  }
  0x19   :  { %26 = dma.hbm_to_vmem [thread:$0]  %s668_s0, 256, %s21_s9, [#allocation3], %s564_s11, %s564_s11, %s565_s12  }
  0x1a   :  { %s566_s3 = smov [#allocation7]  }
  0x1b   :  { %s50_s15 = sshll.u32 %s566_s3, 4  ;;  %s51_s15 = int_to_ptr.vmem [resolvable:$true] %s50_s15 }
  0x1c   :  { %s522_s16 = scalar_lea.vmem %s51_s15, 1024  ;;  %p527_p11 = scmp.lt.s32.totalorder %s51_s15, %s51_s15 }
  0x1d   :  { %p523_p10 = scmp.ne.s32.totalorder %s51_s15, %s522_s16  ;;  %p528_p12 = scmp.lt.s32.totalorder %s522_s16, %s522_s16 }
  0x1f   :  { %p529_p13 = por %p528_p12, %p527_p11 }
  0x21   :  { %p530_p0 = pnand %p529_p13, %p523_p10 }
  0x23   :  { %533 = shalt.err (!%p530_p0)
}
  0x24   :  { %56 = dma.hbm_to_vmem [thread:$0]  %s673_s5, 1024, %s51_s15, [#allocation6], %s561_s27, %s561_s27, %s562_s28  }
  0x25   :  { %554 = dma.done.wait [#allocation3], 256  }
  0x26   :  { %555 = vsyncadd [#allocation3], 4294967040 }
  0x27   :  { %556 = dma.done.wait [#allocation6], 2048  }
  0x28   :  { %557 = vsyncadd [#allocation6], 4294965248  ;;  %v622_v0 = vld [vmem:[#allocation2] sm:$0xff]  ;;  %v624_v1 = vld [vmem:[#allocation2 + $0x8] sm:$0xff]  ;;  %v567_v3 = vmov 0.0   ;;  %v71_v4 = vlaneseq  ;;  %vm568_vm1 = vmmov 0  }
  0x29   :  { %74 = vadd.xlane.f32.xlu0 %v622_v0  ;;  %v454_v2 = vld [vmem:[#allocation5 + $0x38] sm:$0xff]   ;;  %404 = vmatprep.subr.bf16.mxu0 %v567_v3  ;;  %v455_v16 = vld [vmem:[#allocation5 + $0x30] sm:$0xff]   ;;  %v456_v17 = vld [vmem:[#allocation5 + $0x28] sm:$0xff]  }
  0x2a   :  { %424 = vmatprep.subr.bf16.mxu1 %v567_v3  ;;  %405 = vmatpush3.bf16.msra.mxu0 %v454_v2  ;;  %v72_v5 = vand.u32 127, %v71_v4  ;;  %v457_v18 = vld [vmem:[#allocation5 + $0x20] sm:$0xff]   ;;  %v458_v19 = vld [vmem:[#allocation5 + $0x18] sm:$0xff]   ;;  %v459_v20 = vld [vmem:[#allocation5 + $0x10] sm:$0xff]  }
  0x2b   :  { %406 = vmatprep.subr.bf16.mxu0 %v567_v3  ;;  %420 = vmatprep.mubr.msk.bf16.mxu0 %vm568_vm1, %v567_v3  ;;  %v460_v21 = vld [vmem:[#allocation5 + $0x8] sm:$0xff]   ;;  %v461_v22 = vld [vmem:[#allocation5] sm:$0xff]   ;;  %v462_v23 = vld [vmem:[#allocation7 + $0x38] sm:$0xff]  }
  0x2c   :  { %vm73_vm0 = vcmp.lt.s32.totalorder %v72_v5, 32  ;;  %440 = vmatprep.mubr.msk.bf16.mxu1 %vm568_vm1, %v567_v3  ;;  %425 = vmatpush3.bf16.msra.mxu1 %v462_v23  ;;  %v463_v24 = vld [vmem:[#allocation7 + $0x30] sm:$0xff]   ;;  %v464_v25 = vld [vmem:[#allocation7 + $0x28] sm:$0xff]   ;;  %v465_v26 = vld [vmem:[#allocation7 + $0x20] sm:$0xff]  }
  0x2d   :  { %76 = vadd.xlane.f32.xlu0 %v624_v1  ;;  %426 = vmatprep.subr.bf16.mxu1 %v567_v3  ;;  %v466_v27 = vld [vmem:[#allocation7 + $0x18] sm:$0xff]   ;;  %v366_v36 = vld [vmem:[%s669_s1] ss:$0 sm:$0xff]  ;;  %v468_v46 = vld [vmem:[#allocation7 + $0x8] sm:$0xff]  }
  0x2e   :  { %407 = vmatpush3.bf16.msra.mxu0 %v455_v16  ;;  %v367_v40 = vld [vmem:[%s670_s2] ss:$0 sm:$0xff]  ;;  %v469_v47 = vld [vmem:[#allocation7] sm:$0xff]  }
  0x2f   :  { %408 = vmatprep.subr.bf16.mxu0 %v567_v3  ;;  %v467_v45 = vld [vmem:[#allocation7 + $0x10] sm:$0xff]  }
  0x30   :  { %427 = vmatpush3.bf16.msra.mxu1 %v463_v24  ;;  %v368_v48 = vld [vmem:[%s672_s4] ss:$0 sm:$0xff]  ;;  %s569_s4 = smov [#allocation8]  }
  0x31   :  { %428 = vmatprep.subr.bf16.mxu1 %v567_v3  ;;  %v377_v58 = vld [vmem:[%s674_s6] ss:$0 sm:$0xff]  ;;  %s353_s23 = sshll.u32 %s569_s4, 4  ;;  %s354_s23 = int_to_ptr.vmem [resolvable:$true] %s353_s23 }
  0x32   :  { %409 = vmatpush3.bf16.msra.mxu0 %v456_v17  ;;  %s534_s24 = scalar_lea.vmem %s354_s23, 256  ;;  %p539_p2 = scmp.lt.s32.totalorder %s354_s23, %s354_s23 }
  0x33   :  { %410 = vmatprep.subr.bf16.mxu0 %v567_v3  ;;  %p535_p1 = scmp.ne.s32.totalorder %s354_s23, %s534_s24  ;;  %p540_p3 = scmp.lt.s32.totalorder %s534_s24, %s534_s24 }
  0x34   :  { %429 = vmatpush3.bf16.msra.mxu1 %v464_v25 }
  0x35   :  { %430 = vmatprep.subr.bf16.mxu1 %v567_v3  ;;  %p541_p4 = por %p540_p3, %p539_p2 }
  0x36   :  { %411 = vmatpush3.bf16.msra.mxu0 %v457_v18 }
  0x37   :  { %412 = vmatprep.subr.bf16.mxu0 %v567_v3  ;;  %p542_p5 = pnand %p541_p4, %p535_p1 }
  0x38   :  { %431 = vmatpush3.bf16.msra.mxu1 %v465_v26 }
  0x39   :  { %432 = vmatprep.subr.bf16.mxu1 %v567_v3 }
  0x3a   :  { %413 = vmatpush3.bf16.msra.mxu0 %v458_v19 }
  0x3b   :  { %414 = vmatprep.subr.bf16.mxu0 %v567_v3 }
  0x3c   :  { %433 = vmatpush3.bf16.msra.mxu1 %v466_v27 }
  0x3d   :  { %434 = vmatprep.subr.bf16.mxu1 %v567_v3 }
  0x3e   :  { %415 = vmatpush3.bf16.msra.mxu0 %v459_v20 }
  0x3f   :  { %416 = vmatprep.subr.bf16.mxu0 %v567_v3 }
  0x40   :  { %435 = vmatpush3.bf16.msra.mxu1 %v467_v45 }
  0x41   :  { %436 = vmatprep.subr.bf16.mxu1 %v567_v3 }
  0x42   :  { %417 = vmatpush3.bf16.msra.mxu0 %v460_v21 }
  0x43   :  { %418 = vmatprep.subr.bf16.mxu0 %v567_v3 }
  0x44   :  { %437 = vmatpush3.bf16.msra.mxu1 %v468_v46 }
  0x45   :  { %438 = vmatprep.subr.bf16.mxu1 %v567_v3 }
  0x46   :  { %419 = vmatpush3.bf16.msra.mxu0 %v461_v22 }
  0x48   :  { %439 = vmatpush3.bf16.msra.mxu1 %v469_v47 }
  0xb2   :  { %v75_v6 = vpop.xlane.xlu0 %74 }
  0xb3   :  { %v78_v7 = vmul.f32 0.03125, %v75_v6 }
  0xb5   :  { %v80_v8 = vsub.f32 %v622_v0, %v78_v7 }
  0xb6   :  { %v77_v9 = vpop.xlane.xlu0 %76 }
  0xb7   :  { %v79_v10 = vmul.f32 0.03125, %v77_v9  ;;  %v82_v11 = vsel %vm73_vm0, %v80_v8, 0.0 }
  0xb8   :  { %v84_v12 = vmul.f32 %v82_v11, %v82_v11 }
  0xb9   :  { %v81_v13 = vsub.f32 %v624_v1, %v79_v10 }
  0xba   :  { %86 = vadd.xlane.f32.xlu1 %v84_v12 }
  0xbb   :  { %v83_v14 = vsel %vm73_vm0, %v81_v13, 0.0 }
  0xbc   :  { %v85_v15 = vmul.f32 %v83_v14, %v83_v14 }
  0xbe   :  { %88 = vadd.xlane.f32.xlu1 %v85_v15 }
 0x143   :  { %v87_v28 = vpop.xlane.xlu1 %86 }
 0x144   :  { %v90_v29 = vmul.f32 0.03125, %v87_v28 }
 0x146   :  { %v92_v30 = vadd.f32 1e-05, %v90_v29 }
 0x147   :  { %v89_v31 = vpop.xlane.xlu1 %88 }
 0x148   :  { %470 = vrsqrt.f32 %v92_v30  ;;  %v91_v32 = vmul.f32 0.03125, %v89_v31 }
 0x14a   :  { %v93_v33 = vadd.f32 1e-05, %v91_v32 }
 0x14c   :  { %472 = vrsqrt.f32 %v93_v33 }
 0x155   :  { %v471_v34 = vpop.eup %470 }
 0x156   :  { %v96_v35 = vmul.f32 %v471_v34, %v82_v11 }
 0x158   :  { %v105_v39 = vmul.f32 %v366_v36, %v96_v35 }
 0x159   :  { %v473_v37 = vpop.eup %472 }
 0x15a   :  { %v97_v38 = vmul.f32 %v473_v37, %v83_v14  ;;  %v114_v42 = vadd.f32 %v367_v40, %v105_v39 }
 0x15c   :  { %v106_v41 = vmul.f32 %v366_v36, %v97_v38 }
 0x15e   :  { %v115_v43 = vadd.f32 %v367_v40, %v106_v41 }
 0x160   :  { %v116_v44 = vpack.c.bf16 %v115_v43, %v114_v42 }
 0x162   :  { %421 = vmatmul.mubr.bf16.vlgmr.msra.gmra.mxu0 %v116_v44 }
 0x222   :  { %v222_v49 = vpop.f32.mrf.mxu0 }
 0x223   :  { %v223_v51 = vadd.f32 %v368_v48, %v222_v49 }
 0x224   :  { %v422_v50 = vpop.f32.mrf.mxu0 }
 0x225   :  { %v229_v55 = vmax.f32 %v223_v51, 0.0 }
 0x226   :  { %v225_v52 = vpop.f32.mrf.mxu0 }
 0x227   :  { %v226_v53 = vadd.f32 %v368_v48, %v225_v52 }
 0x228   :  { %v423_v54 = vpop.f32.mrf.mxu0 }
 0x229   :  { %v230_v56 = vmax.f32 %v226_v53, 0.0 }
 0x22b   :  { %v231_v57 = vpack.c.bf16 %v230_v56, %v229_v55 }
 0x22d   :  { %441 = vmatmul.mubr.bf16.vlgmr.msra.gmra.mxu1 %v231_v57 }
 0x2ed   :  { %v337_v59 = vpop.f32.mrf.mxu1 }
 0x2ee   :  { %v338_v60 = vadd.f32 %v377_v58, %v337_v59 }
 0x2ef   :  { %v442_v61 = vpop.f32.mrf.mxu1 }
 0x2f0   :  { %v344_v62 = vadd.f32 %v338_v60, %v622_v0 }
 0x2f1   :  { %v340_v63 = vpop.f32.mrf.mxu1 }
 0x2f2   :  { %346 = vst [vmem:[#allocation8] sm:$0xff] %v344_v62  ;;  %v341_v2 = vadd.f32 %v377_v58, %v340_v63 }
 0x2f3   :  { %v443_v3 = vpop.f32.mrf.mxu1 }
 0x2f4   :  { %v345_v4 = vadd.f32 %v341_v2, %v624_v1 }
 0x2f6   :  { %347 = vst [vmem:[#allocation8 + $0x8] sm:$0xff] %v345_v4 }
 0x2f7   :  { %545 = shalt.err (!%p542_p5)
}
 0x2f8   :  { %359 = dma.vmem_to_hbm [thread:$0]  %s354_s23, 256, %s675_s7, [#allocation4], %s564_s11, %s564_s11, %s565_s12  }
 0x2f9   :  { %558 = dma.done.wait [#allocation4], 256  }
 0x2fa   :  { %559 = vsyncadd [#allocation4], 4294967040 }
 0x2fb   :  { %363 = vsyncpa [#allocation3], 1 }
 0x2fc   :  { %364 = vsyncpa [#allocation6], 1 }
 0x2fd   :  { %365 = vsyncpa [#allocation4], 1 }

// kernel: tpu_custom_call.1
= control target key start
LH: loop header
LB: loop body
LE: loop exit
PB: predicated region body
PF: predicated region fallthrough
CT: control target
= control target key end

     0   :  { %12 = vsyncpa [#allocation3], 0  ;;  %s668_s0 = inlined_call_operand.hbm [shape: f32[16,128], index: 0, kind: input, shape index: {}]   ;;  %s669_s1 = inlined_call_operand.vmem [shape: f32[1,128], index: 1, kind: input, shape index: {}]   ;;  %s670_s2 = inlined_call_operand.vmem [shape: f32[1,128], index: 2, kind: input, shape index: {}]   ;;  %s671_s3 = inlined_call_operand.hbm [shape: bf16[128,128], index: 3, kind: input, shape index: {}]   ;;  %s672_s4 = inlined_call_operand.vmem [shape: f32[1,128], index: 4, kind: input, shape index: {}]   ;;  %s673_s5 = inlined_call_operand.hbm [shape: bf16[128,128], index: 5, kind: input, shape index: {}]   ;;  %s674_s6 = inlined_call_operand.vmem [shape: f32[1,128], index: 6, kind: input, shape index: {}]   ;;  %s675_s7 = inlined_call_operand.hbm [shape: f32[16,128], index: 7, kind: output, shape index: {}]  }
   0x1   :  { %13 = vsyncpa [#allocation6], 0 }
   0x2   :  { %14 = vsyncpa [#allocation4], 0  ;;  %s560_s24 = smov [#allocation5]  }
   0x3   :  { %s36_s25 = sshll.u32 %s560_s24, 4  ;;  %s37_s25 = int_to_ptr.vmem [resolvable:$true] %s36_s25 }
   0x4   :  { %s482_s26 = scalar_lea.vmem %s37_s25, 1024  ;;  %p487_p1 = scmp.lt.s32.totalorder %s37_s25, %s37_s25 }
   0x5   :  { %p483_p0 = scmp.ne.s32.totalorder %s37_s25, %s482_s26  ;;  %p488_p2 = scmp.lt.s32.totalorder %s482_s26, %s482_s26 }
   0x7   :  { %p489_p3 = por %p488_p2, %p487_p1 }
   0x9   :  { %p490_p4 = pnand %p489_p3, %p483_p0 }
   0xb   :  { %493 = shalt.err (!%p490_p4)
}
   0xc   :  { %s561_s27 = smov 64   ;;  %s562_s28 = smov 4  }
   0xd   :  { %42 = dma.hbm_to_vmem [thread:$0]  %s671_s3, 1024, %s37_s25, [#allocation6], %s561_s27, %s561_s27, %s562_s28  }
   0xe   :  { %s563_s8 = smov [#allocation2]  }
   0xf   :  { %s20_s9 = sshll.u32 %s563_s8, 4  ;;  %s21_s9 = int_to_ptr.vmem [resolvable:$true] %s20_s9 }
  0x10   :  { %s502_s10 = scalar_lea.vmem %s21_s9, 256  ;;  %p507_p6 = scmp.lt.s32.totalorder %s21_s9, %s21_s9 }
  0x11   :  { %p503_p5 = scmp.ne.s32.totalorder %s21_s9, %s502_s10  ;;  %p508_p7 = scmp.lt.s32.totalorder %s502_s10, %s502_s10 }
  0x13   :  { %p509_p8 = por %p508_p7, %p507_p6 }
  0x15   :  { %p510_p9 = pnand %p509_p8, %p503_p5 }
  0x17   :  { %513 = shalt.err (!%p510_p9)
}
  0x18   :  { %s564_s11 = smov 128   ;;  %s565_s12 = smov 8  }
  0x19   :  { %26 = dma.hbm_to_vmem [thread:$0]  %s668_s0, 256, %s21_s9, [#allocation3], %s564_s11, %s564_s11, %s565_s12  }
  0x1a   :  { %s566_s3 = smov [#allocation7]  }
  0x1b   :  { %s50_s15 = sshll.u32 %s566_s3, 4  ;;  %s51_s15 = int_to_ptr.vmem [resolvable:$true] %s50_s15 }
  0x1c   :  { %s522_s16 = scalar_lea.vmem %s51_s15, 1024  ;;  %p527_p11 = scmp.lt.s32.totalorder %s51_s15, %s51_s15 }
  0x1d   :  { %p523_p10 = scmp.ne.s32.totalorder %s51_s15, %s522_s16  ;;  %p528_p12 = scmp.lt.s32.totalorder %s522_s16, %s522_s16 }
  0x1f   :  { %p529_p13 = por %p528_p12, %p527_p11 }
  0x21   :  { %p530_p0 = pnand %p529_p13, %p523_p10 }
  0x23   :  { %533 = shalt.err (!%p530_p0)
}
  0x24   :  { %56 = dma.hbm_to_vmem [thread:$0]  %s673_s5, 1024, %s51_s15, [#allocation6], %s561_s27, %s561_s27, %s562_s28  }
  0x25   :  { %554 = dma.done.wait [#allocation3], 256  }
  0x26   :  { %555 = vsyncadd [#allocation3], 4294967040 }
  0x27   :  { %556 = dma.done.wait [#allocation6], 2048  }
  0x28   :  { %557 = vsyncadd [#allocation6], 4294965248  ;;  %v622_v0 = vld [vmem:[#allocation2] sm:$0xff]  ;;  %v624_v1 = vld [vmem:[#allocation2 + $0x8] sm:$0xff]  ;;  %v567_v3 = vmov 0.0   ;;  %v71_v4 = vlaneseq  ;;  %vm568_vm1 = vmmov 0  }
  0x29   :  { %74 = vadd.xlane.f32.xlu0 %v622_v0  ;;  %v454_v2 = vld [vmem:[#allocation5 + $0x38] sm:$0xff]   ;;  %404 = vmatprep.subr.bf16.mxu0 %v567_v3  ;;  %v455_v16 = vld [vmem:[#allocation5 + $0x30] sm:$0xff]   ;;  %v456_v17 = vld [vmem:[#allocation5 + $0x28] sm:$0xff]  }
  0x2a   :  { %424 = vmatprep.subr.bf16.mxu1 %v567_v3  ;;  %405 = vmatpush3.bf16.msra.mxu0 %v454_v2  ;;  %v72_v5 = vand.u32 127, %v71_v4  ;;  %v457_v18 = vld [vmem:[#allocation5 + $0x20] sm:$0xff]   ;;  %v458_v19 = vld [vmem:[#allocation5 + $0x18] sm:$0xff]   ;;  %v459_v20 = vld [vmem:[#allocation5 + $0x10] sm:$0xff]  }
  0x2b   :  { %406 = vmatprep.subr.bf16.mxu0 %v567_v3  ;;  %420 = vmatprep.mubr.msk.bf16.mxu0 %vm568_vm1, %v567_v3  ;;  %v460_v21 = vld [vmem:[#allocation5 + $0x8] sm:$0xff]   ;;  %v461_v22 = vld [vmem:[#allocation5] sm:$0xff]   ;;  %v462_v23 = vld [vmem:[#allocation7 + $0x38] sm:$0xff]  }
  0x2c   :  { %vm73_vm0 = vcmp.lt.s32.totalorder %v72_v5, 32  ;;  %440 = vmatprep.mubr.msk.bf16.mxu1 %vm568_vm1, %v567_v3  ;;  %425 = vmatpush3.bf16.msra.mxu1 %v462_v23  ;;  %v463_v24 = vld [vmem:[#allocation7 + $0x30] sm:$0xff]   ;;  %v464_v25 = vld [vmem:[#allocation7 + $0x28] sm:$0xff]   ;;  %v465_v26 = vld [vmem:[#allocation7 + $0x20] sm:$0xff]  }
  0x2d   :  { %76 = vadd.xlane.f32.xlu0 %v624_v1  ;;  %426 = vmatprep.subr.bf16.mxu1 %v567_v3  ;;  %v466_v27 = vld [vmem:[#allocation7 + $0x18] sm:$0xff]   ;;  %v366_v36 = vld [vmem:[%s669_s1] ss:$0 sm:$0xff]  ;;  %v468_v46 = vld [vmem:[#allocation7 + $0x8] sm:$0xff]  }
  0x2e   :  { %407 = vmatpush3.bf16.msra.mxu0 %v455_v16  ;;  %v367_v40 = vld [vmem:[%s670_s2] ss:$0 sm:$0xff]  ;;  %v469_v47 = vld [vmem:[#allocation7] sm:$0xff]  }
  0x2f   :  { %408 = vmatprep.subr.bf16.mxu0 %v567_v3  ;;  %v467_v45 = vld [vmem:[#allocation7 + $0x10] sm:$0xff]  }
  0x30   :  { %427 = vmatpush3.bf16.msra.mxu1 %v463_v24  ;;  %v368_v48 = vld [vmem:[%s672_s4] ss:$0 sm:$0xff]  ;;  %s569_s4 = smov [#allocation8]  }
  0x31   :  { %428 = vmatprep.subr.bf16.mxu1 %v567_v3  ;;  %v377_v58 = vld [vmem:[%s674_s6] ss:$0 sm:$0xff]  ;;  %s353_s23 = sshll.u32 %s569_s4, 4  ;;  %s354_s23 = int_to_ptr.vmem [resolvable:$true] %s353_s23 }
  0x32   :  { %409 = vmatpush3.bf16.msra.mxu0 %v456_v17  ;;  %s534_s24 = scalar_lea.vmem %s354_s23, 256  ;;  %p539_p2 = scmp.lt.s32.totalorder %s354_s23, %s354_s23 }
  0x33   :  { %410 = vmatprep.subr.bf16.mxu0 %v567_v3  ;;  %p535_p1 = scmp.ne.s32.totalorder %s354_s23, %s534_s24  ;;  %p540_p3 = scmp.lt.s32.totalorder %s534_s24, %s534_s24 }
  0x34   :  { %429 = vmatpush3.bf16.msra.mxu1 %v464_v25 }
  0x35   :  { %430 = vmatprep.subr.bf16.mxu1 %v567_v3  ;;  %p541_p4 = por %p540_p3, %p539_p2 }
  0x36   :  { %411 = vmatpush3.bf16.msra.mxu0 %v457_v18 }
  0x37   :  { %412 = vmatprep.subr.bf16.mxu0 %v567_v3  ;;  %p542_p5 = pnand %p541_p4, %p535_p1 }
  0x38   :  { %431 = vmatpush3.bf16.msra.mxu1 %v465_v26 }
  0x39   :  { %432 = vmatprep.subr.bf16.mxu1 %v567_v3 }
  0x3a   :  { %413 = vmatpush3.bf16.msra.mxu0 %v458_v19 }
  0x3b   :  { %414 = vmatprep.subr.bf16.mxu0 %v567_v3 }
  0x3c   :  { %433 = vmatpush3.bf16.msra.mxu1 %v466_v27 }
  0x3d   :  { %434 = vmatprep.subr.bf16.mxu1 %v567_v3 }
  0x3e   :  { %415 = vmatpush3.bf16.msra.mxu0 %v459_v20 }
  0x3f   :  { %416 = vmatprep.subr.bf16.mxu0 %v567_v3 }
  0x40   :  { %435 = vmatpush3.bf16.msra.mxu1 %v467_v45 }
  0x41   :  { %436 = vmatprep.subr.bf16.mxu1 %v567_v3 }
  0x42   :  { %417 = vmatpush3.bf16.msra.mxu0 %v460_v21 }
  0x43   :  { %418 = vmatprep.subr.bf16.mxu0 %v567_v3 }
  0x44   :  { %437 = vmatpush3.bf16.msra.mxu1 %v468_v46 }
  0x45   :  { %438 = vmatprep.subr.bf16.mxu1 %v567_v3 }
  0x46   :  { %419 = vmatpush3.bf16.msra.mxu0 %v461_v22 }
  0x48   :  { %439 = vmatpush3.bf16.msra.mxu1 %v469_v47 }
  0xb2   :  { %v75_v6 = vpop.xlane.xlu0 %74 }
  0xb3   :  { %v78_v7 = vmul.f32 0.03125, %v75_v6 }
  0xb5   :  { %v80_v8 = vsub.f32 %v622_v0, %v78_v7 }
  0xb6   :  { %v77_v9 = vpop.xlane.xlu0 %76 }
  0xb7   :  { %v79_v10 = vmul.f32 0.03125, %v77_v9  ;;  %v82_v11 = vsel %vm73_vm0, %v80_v8, 0.0 }
  0xb8   :  { %v84_v12 = vmul.f32 %v82_v11, %v82_v11 }
  0xb9   :  { %v81_v13 = vsub.f32 %v624_v1, %v79_v10 }
  0xba   :  { %86 = vadd.xlane.f32.xlu1 %v84_v12 }
  0xbb   :  { %v83_v14 = vsel %vm73_vm0, %v81_v13, 0.0 }
  0xbc   :  { %v85_v15 = vmul.f32 %v83_v14, %v83_v14 }
  0xbe   :  { %88 = vadd.xlane.f32.xlu1 %v85_v15 }
 0x143   :  { %v87_v28 = vpop.xlane.xlu1 %86 }
 0x144   :  { %v90_v29 = vmul.f32 0.03125, %v87_v28 }
 0x146   :  { %v92_v30 = vadd.f32 1e-05, %v90_v29 }
 0x147   :  { %v89_v31 = vpop.xlane.xlu1 %88 }
 0x148   :  { %470 = vrsqrt.f32 %v92_v30  ;;  %v91_v32 = vmul.f32 0.03125, %v89_v31 }
 0x14a   :  { %v93_v33 = vadd.f32 1e-05, %v91_v32 }
 0x14c   :  { %472 = vrsqrt.f32 %v93_v33 }
 0x155   :  { %v471_v34 = vpop.eup %470 }
 0x156   :  { %v96_v35 = vmul.f32 %v471_v34, %v82_v11 }
 0x158   :  { %v105_v39 = vmul.f32 %v366_v36, %v96_v35 }
 0x159   :  { %v473_v37 = vpop.eup %472 }
 0x15a   :  { %v97_v38 = vmul.f32 %v473_v37, %v83_v14  ;;  %v114_v42 = vadd.f32 %v367_v40, %v105_v39 }
 0x15c   :  { %v106_v41 = vmul.f32 %v366_v36, %v97_v38 }
 0x15e   :  { %v115_v43 = vadd.f32 %v367_v40, %v106_v41 }
 0x160   :  { %v116_v44 = vpack.c.bf16 %v115_v43, %v114_v42 }
 0x162   :  { %421 = vmatmul.mubr.bf16.vlgmr.msra.gmra.mxu0 %v116_v44 }
 0x222   :  { %v222_v49 = vpop.f32.mrf.mxu0 }
 0x223   :  { %v223_v51 = vadd.f32 %v368_v48, %v222_v49 }
 0x224   :  { %v422_v50 = vpop.f32.mrf.mxu0 }
 0x225   :  { %v229_v55 = vmax.f32 %v223_v51, 0.0 }
 0x226   :  { %v225_v52 = vpop.f32.mrf.mxu0 }
 0x227   :  { %v226_v53 = vadd.f32 %v368_v48, %v225_v52 }
 0x228   :  { %v423_v54 = vpop.f32.mrf.mxu0 }
 0x229   :  { %v230_v56 = vmax.f32 %v226_v53, 0.0 }
 0x22b   :  { %v231_v57 = vpack.c.bf16 %v230_v56, %v229_v55 }
 0x22d   :  { %441 = vmatmul.mubr.bf16.vlgmr.msra.gmra.mxu1 %v231_v57 }
 0x2ed   :  { %v337_v59 = vpop.f32.mrf.mxu1 }
 0x2ee   :  { %v338_v60 = vadd.f32 %v377_v58, %v337_v59 }
 0x2ef   :  { %v442_v61 = vpop.f32.mrf.mxu1 }
 0x2f0   :  { %v344_v62 = vadd.f32 %v338_v60, %v622_v0 }
 0x2f1   :  { %v340_v63 = vpop.f32.mrf.mxu1 }
 0x2f2   :  { %346 = vst [vmem:[#allocation8] sm:$0xff] %v344_v62  ;;  %v341_v2 = vadd.f32 %v377_v58, %v340_v63 }
 0x2f3   :  { %v443_v3 = vpop.f32.mrf.mxu1 }
 0x2f4   :  { %v345_v4 = vadd.f32 %v341_v2, %v624_v1 }
 0x2f6   :  { %347 = vst [vmem:[#allocation8 + $0x8] sm:$0xff] %v345_v4 }
 0x2f7   :  { %545 = shalt.err (!%p542_p5)
}
 0x2f8   :  { %359 = dma.vmem_to_hbm [thread:$0]  %s354_s23, 256, %s675_s7, [#allocation4], %s564_s11, %s564_s11, %s565_s12  }
 0x2f9   :  { %558 = dma.done.wait [#allocation4], 256  }
 0x2fa   :  { %559 = vsyncadd [#allocation4], 4294967040 }
 0x2fb   :  { %363 = vsyncpa [#allocation3], 1 }
 0x2fc   :  { %364 = vsyncpa [#allocation6], 1 }
 0x2fd   :  { %365 = vsyncpa [#allocation4], 1 }

</bundles_post_ra>
